<compile_context>
chip_gen: v7x
topology: tpu7x:2x2x1
jax: 0.10.0
libtpu: 0.0.40
codegen_flags: <defaults>
</compile_context>

<pallas_src>
import functools

import jax
import jax.numpy as jnp
from jax.experimental import pallas as pl
from jax.experimental.pallas import tpu as pltpu

LANE = 128  # TPU lane width; feature dims are padded to multiples of this.


def _round_up(v, m):
    return ((v + m - 1) // m) * m


def _pad2(a, rows, cols):
    return jnp.pad(a, ((0, rows - a.shape[0]), (0, cols - a.shape[1])))


# ----------------------------------------------------------------------------
# Pallas kernel: one fused SAGEConv('mean') layer tile (+ optional ReLU)
# grid = (row tiles, K tiles);  K is the adjacency-reduction axis (last, arbitrary)
# ----------------------------------------------------------------------------
def _sage_layer_kernel(adj_ref, xk_ref, xi_ref, ws_ref, wn_ref, b_ref,
                       o_ref, acc_ref, *, apply_relu, project_first):
    k = pl.program_id(1)
    num_k = pl.num_programs(1)

    # First K step: initialize accumulator with the self term + bias
    # (done once per row tile, not per K step).
    @pl.when(k == 0)
    def _init():
        acc_ref[...] = (
            jnp.dot(xi_ref[...], ws_ref[...], preferred_element_type=jnp.float32)
            + b_ref[...]
        )

    # Neighbor term for this K tile of the adjacency.
    if project_first:
        # A @ (X @ W_neigh): cheaper when f_out <= f_in (keeps the N^2 reduction
        # operand narrow in lanes).
        proj = jnp.dot(xk_ref[...], wn_ref[...], preferred_element_type=jnp.float32)
        acc_ref[...] += jnp.dot(
            adj_ref[...], proj.astype(adj_ref.dtype),
            preferred_element_type=jnp.float32)
    else:
        # (A @ X) @ W_neigh: cheaper when f_out > f_in.
        agg = jnp.dot(adj_ref[...], xk_ref[...], preferred_element_type=jnp.float32)
        acc_ref[...] += jnp.dot(
            agg.astype(wn_ref.dtype), wn_ref[...],
            preferred_element_type=jnp.float32)

    # Last K step: epilogue (ReLU) + lane-dense store.
    @pl.when(k == num_k - 1)
    def _finalize():
        out = acc_ref[...]
        if apply_relu:
            out = jnp.maximum(out, 0.0)
        o_ref[...] = out.astype(o_ref.dtype)


# ----------------------------------------------------------------------------
# One SAGEConv('mean') layer as a tiled, pipelined pallas_call
# ----------------------------------------------------------------------------
def sage_conv(adj_pad, x_pad, w_self, w_neigh, bias, *, apply_relu,
              f_in, f_out, compute_dtype=jnp.bfloat16, tm=128, tk=128):
    """adj_pad: (n_pad, n_pad) compute_dtype, row-normalized, zero-padded.
       x_pad:   (n_pad, fin_pad) compute_dtype, zero-padded.
       w_self/w_neigh: (f_in, f_out) f32;  bias: (1, f_out) f32.
       Returns (n_pad, fout_pad) f32 (caller slices padding off)."""
    n_pad = adj_pad.shape[0]
    fin_pad = x_pad.shape[1]
    fout_pad = _round_up(f_out, LANE)

    assert n_pad % tm == 0 and n_pad % tk == 0, "node padding must match tiles"
    assert fin_pad == _round_up(f_in, LANE)

    ws = _pad2(w_self, fin_pad, fout_pad).astype(compute_dtype)
    wn = _pad2(w_neigh, fin_pad, fout_pad).astype(compute_dtype)
    b = _pad2(bias, 1, fout_pad).astype(jnp.float32)

    # Reassociate A @ (X @ Wn) when the output width is not larger than the input.
    project_first = f_out <= f_in

    kernel = functools.partial(_sage_layer_kernel,
                               apply_relu=apply_relu,
                               project_first=project_first)
    grid = (n_pad // tm, n_pad // tk)

    return pl.pallas_call(
        kernel,
        out_shape=jax.ShapeDtypeStruct((n_pad, fout_pad), jnp.float32),
        grid_spec=pltpu.PrefetchScalarGridSpec(
            num_scalar_prefetch=0,
            grid=grid,
            in_specs=[
                # adjacency tile (TM, TK) at (i, k)
                pl.BlockSpec((tm, tk), lambda i, k: (i, k)),
                # feature rows entering the aggregation (TK, Fin_pad) at (k, 0)
                pl.BlockSpec((tk, fin_pad), lambda i, k: (k, 0)),
                # feature rows for the self term (TM, Fin_pad) at (i, 0) -- resident over k
                pl.BlockSpec((tm, fin_pad), lambda i, k: (i, 0)),
                # weights / bias: constant block index -> resident, no re-DMA per step
                pl.BlockSpec((fin_pad, fout_pad), lambda i, k: (0, 0)),
                pl.BlockSpec((fin_pad, fout_pad), lambda i, k: (0, 0)),
                pl.BlockSpec((1, fout_pad), lambda i, k: (0, 0)),
            ],
            out_specs=pl.BlockSpec((tm, fout_pad), lambda i, k: (i, 0)),
            scratch_shapes=[pltpu.VMEM((tm, fout_pad), jnp.float32)],
        ),
        compiler_params=pltpu.CompilerParams(
            dimension_semantics=("parallel", "arbitrary"),
            vmem_limit_bytes=64 * 1024 * 1024,
        ),
    )(adj_pad, x_pad, x_pad, ws, wn, b)


# ----------------------------------------------------------------------------
# GraphSAGE wrapper: conv1 -> ReLU -> conv2
# ----------------------------------------------------------------------------
def graphsage_forward(adj_norm, x, params, *, compute_dtype=jnp.bfloat16,
                      tm=128, tk=128):
    n, f_in = x.shape
    f_hid = params["w_self1"].shape[1]
    f_out = params["w_self2"].shape[1]

    n_pad = _round_up(n, max(tm, tk))
    fin_pad = _round_up(f_in, LANE)

    # Pad + cast once; the bf16 adjacency is shared by both layers.
    adj_pad = _pad2(adj_norm, n_pad, n_pad).astype(compute_dtype)
    x_pad = _pad2(x, n_pad, fin_pad).astype(compute_dtype)

    h_pad = sage_conv(adj_pad, x_pad,
                      params["w_self1"], params["w_neigh1"], params["b1"],
                      apply_relu=True, f_in=f_in, f_out=f_hid,
                      compute_dtype=compute_dtype, tm=tm, tk=tk)

    out_pad = sage_conv(adj_pad, h_pad.astype(compute_dtype),
                        params["w_self2"], params["w_neigh2"], params["b2"],
                        apply_relu=False, f_in=f_hid, f_out=f_out,
                        compute_dtype=compute_dtype, tm=tm, tk=tk)

    return out_pad[:n, :f_out]


# ----------------------------------------------------------------------------
# Helpers: adjacency + pure-JAX reference
# ----------------------------------------------------------------------------
def build_adj_norm(num_nodes, edges, dtype=jnp.float32):
    """Dense symmetric adjacency, row-normalized (mean aggregator)."""
    e = jnp.asarray(edges, dtype=jnp.int32)
    src = jnp.concatenate([e[:, 0], e[:, 1]])
    dst = jnp.concatenate([e[:, 1], e[:, 0]])
    a = jnp.zeros((num_nodes, num_nodes), dtype=dtype).at[src, dst].set(1.0)
    deg = jnp.clip(a.sum(axis=1, keepdims=True), 1.0, None)  # avoid div-by-0
    return a / deg


def reference_forward(adj_norm, x, params):
    """Pure-JAX (f32) reference for correctness check."""
    h = (x @ params["w_self1"]
         + (adj_norm @ x) @ params["w_neigh1"]
         + params["b1"])
    h = jnp.maximum(h, 0.0)
    return (h @ params["w_self2"]
            + (adj_norm @ h) @ params["w_neigh2"]
            + params["b2"])


if __name__ == "__main__":
    # Small deterministic problem: 32-node graph (ring + a few chords).
    N = 32
    IN_FEATS, HIDDEN_FEATS, OUT_FEATS = 16, 32, 16

    edges = ([(i, (i + 1) % N) for i in range(N)]
             + [(i, (i + 7) % N) for i in range(0, N, 4)])
    adj_norm = build_adj_norm(N, edges)

    key = jax.random.PRNGKey(0)
    kx, k1, k2, k3, k4 = jax.random.split(key, 5)
    x = jax.random.normal(kx, (N, IN_FEATS), dtype=jnp.float32)

    params = {
        "w_self1":  jax.random.normal(k1, (IN_FEATS, HIDDEN_FEATS), jnp.float32) * 0.1,
        "w_neigh1": jax.random.normal(k2, (IN_FEATS, HIDDEN_FEATS), jnp.float32) * 0.1,
        "b1":       jnp.zeros((1, HIDDEN_FEATS), jnp.float32),
        "w_self2":  jax.random.normal(k3, (HIDDEN_FEATS, OUT_FEATS), jnp.float32) * 0.1,
        "w_neigh2": jax.random.normal(k4, (HIDDEN_FEATS, OUT_FEATS), jnp.float32) * 0.1,
        "b2":       jnp.zeros((1, OUT_FEATS), jnp.float32),
    }

    out = graphsage_forward(adj_norm, x, params)
    out = jax.block_until_ready(out)
    assert out.shape == (N, OUT_FEATS)

    # Primary check: against a reference fed the same bf16-quantized inputs
    # (isolates kernel logic from expected bf16 rounding).
    q = lambda a: a.astype(jnp.bfloat16).astype(jnp.float32)
    params_q = {k: (q(v) if k.startswith("w") else v) for k, v in params.items()}
    ref_q = reference_forward(q(adj_norm), q(x), params_q)
    assert jnp.allclose(out, ref_q, atol=2e-2, rtol=2e-2), (
        float(jnp.max(jnp.abs(out - ref_q))))

    # Sanity check: against the full-precision f32 reference (loose tolerance
    # accounts for bf16 compute inside the kernel).
    ref = reference_forward(adj_norm, x, params)
    assert jnp.allclose(out, ref, atol=1e-1, rtol=1e-1), (
        float(jnp.max(jnp.abs(out - ref))))

    print("KERNEL_OK")
</pallas_src>

<mosaic_0001>
module attributes {stable_mosaic.version = 11 : i64} {
  func.func @_sage_layer_kernel(%arg0: i32, %arg1: i32, %arg2: memref<128x128xbf16, #tpu.memory_space<vmem>>, %arg3: memref<128x128xbf16, #tpu.memory_space<vmem>>, %arg4: memref<128x128xbf16, #tpu.memory_space<vmem>>, %arg5: memref<128x128xbf16, #tpu.memory_space<vmem>>, %arg6: memref<128x128xbf16, #tpu.memory_space<vmem>>, %arg7: memref<1x128xf32, #tpu.memory_space<vmem>>, %arg8: memref<128x128xf32, #tpu.memory_space<vmem>>, %arg9: memref<128x128xf32, #tpu.memory_space<vmem>>) attributes {dimension_semantics = [#tpu.dimension_semantics<parallel>, #tpu.dimension_semantics<arbitrary>], iteration_bounds = array<i64: 1, 1>, scalar_prefetch = 0 : i64, scratch_operands = 1 : i64, tpu.core_type = #tpu.core_type<tc>, window_params = [{transform_indices = @transform_0, window_bounds = array<i64: 128, 128>}, {transform_indices = @transform_1, window_bounds = array<i64: 128, 128>}, {transform_indices = @transform_2, window_bounds = array<i64: 128, 128>}, {pipeline_mode = #tpu.pipeline_mode<synchronous>, transform_indices = @transform_3, window_bounds = array<i64: 128, 128>}, {pipeline_mode = #tpu.pipeline_mode<synchronous>, transform_indices = @transform_4, window_bounds = array<i64: 128, 128>}, {pipeline_mode = #tpu.pipeline_mode<synchronous>, transform_indices = @transform_5, window_bounds = array<i64: 1, 128>}, {transform_indices = @transform_6, window_bounds = array<i64: 128, 128>}]} {
    %c0_i32 = arith.constant 0 : i32
    %0 = arith.cmpi eq, %arg1, %c0_i32 : i32
    %1 = arith.extui %0 : i1 to i32
    %c0_i32_0 = arith.constant 0 : i32
    %2 = arith.cmpi ne, %1, %c0_i32_0 : i32
    scf.if %2 {
      %c0_13 = arith.constant 0 : index
      %c0_14 = arith.constant 0 : index
      %15 = vector.load %arg4[%c0_13, %c0_14] : memref<128x128xbf16, #tpu.memory_space<vmem>>, vector<128x128xbf16>
      %c0_15 = arith.constant 0 : index
      %c0_16 = arith.constant 0 : index
      %16 = vector.load %arg5[%c0_15, %c0_16] : memref<128x128xbf16, #tpu.memory_space<vmem>>, vector<128x128xbf16>
      %cst_17 = arith.constant dense<0.000000e+00> : vector<128x128xf32>
      %17 = tpu.matmul %15, %16, %cst_17 {dimension_numbers = #tpu.dot_dimension_numbers<[1], [0], [0], [1], [0, 0, 1, 1], [], []>} : vector<128x128xbf16>, vector<128x128xbf16>, vector<128x128xf32> -> vector<128x128xf32>
      %c0_18 = arith.constant 0 : index
      %c0_19 = arith.constant 0 : index
      %18 = vector.load %arg7[%c0_18, %c0_19] : memref<1x128xf32, #tpu.memory_space<vmem>>, vector<1x128xf32>
      %19 = vector.broadcast %18 : vector<1x128xf32> to vector<128x128xf32>
      %20 = arith.addf %17, %19 : vector<128x128xf32>
      %c0_20 = arith.constant 0 : index
      %c0_21 = arith.constant 0 : index
      %21 = vector.load %arg9[%c0_20, %c0_21] : memref<128x128xf32, #tpu.memory_space<vmem>>, vector<128x128xf32>
      tpu.vector_store %arg9[%c0_20, %c0_21], %20 {strides = array<i32>} : memref<128x128xf32, #tpu.memory_space<vmem>>, vector<128x128xf32>,
    } else {
    }
    %c0 = arith.constant 0 : index
    %c0_1 = arith.constant 0 : index
    %3 = vector.load %arg2[%c0, %c0_1] : memref<128x128xbf16, #tpu.memory_space<vmem>>, vector<128x128xbf16>
    %c0_2 = arith.constant 0 : index
    %c0_3 = arith.constant 0 : index
    %4 = vector.load %arg3[%c0_2, %c0_3] : memref<128x128xbf16, #tpu.memory_space<vmem>>, vector<128x128xbf16>
    %cst = arith.constant dense<0.000000e+00> : vector<128x128xf32>
    %5 = tpu.matmul %3, %4, %cst {dimension_numbers = #tpu.dot_dimension_numbers<[1], [0], [0], [1], [0, 0, 1, 1], [], []>} : vector<128x128xbf16>, vector<128x128xbf16>, vector<128x128xf32> -> vector<128x128xf32>
    %c0_4 = arith.constant 0 : index
    %c0_5 = arith.constant 0 : index
    %6 = vector.load %arg9[%c0_4, %c0_5] : memref<128x128xf32, #tpu.memory_space<vmem>>, vector<128x128xf32>
    %7 = arith.truncf %5 : vector<128x128xf32> to vector<128x128xbf16>
    %c0_6 = arith.constant 0 : index
    %c0_7 = arith.constant 0 : index
    %8 = vector.load %arg6[%c0_6, %c0_7] : memref<128x128xbf16, #tpu.memory_space<vmem>>, vector<128x128xbf16>
    %cst_8 = arith.constant dense<0.000000e+00> : vector<128x128xf32>
    %9 = tpu.matmul %7, %8, %cst_8 {dimension_numbers = #tpu.dot_dimension_numbers<[1], [0], [0], [1], [0, 0, 1, 1], [], []>} : vector<128x128xbf16>, vector<128x128xbf16>, vector<128x128xf32> -> vector<128x128xf32>
    %10 = arith.addf %6, %9 : vector<128x128xf32>
    %c0_9 = arith.constant 0 : index
    %c0_10 = arith.constant 0 : index
    %11 = vector.load %arg9[%c0_9, %c0_10] : memref<128x128xf32, #tpu.memory_space<vmem>>, vector<128x128xf32>
    tpu.vector_store %arg9[%c0_9, %c0_10], %10 {strides = array<i32>} : memref<128x128xf32, #tpu.memory_space<vmem>>, vector<128x128xf32>,
    %c0_i32_11 = arith.constant 0 : i32
    %12 = arith.cmpi eq, %arg1, %c0_i32_11 : i32
    %13 = arith.extui %12 : i1 to i32
    %c0_i32_12 = arith.constant 0 : i32
    %14 = arith.cmpi ne, %13, %c0_i32_12 : i32
    scf.if %14 {
      %c0_13 = arith.constant 0 : index
      %c0_14 = arith.constant 0 : index
      %15 = vector.load %arg9[%c0_13, %c0_14] : memref<128x128xf32, #tpu.memory_space<vmem>>, vector<128x128xf32>
      %cst_15 = arith.constant 0.000000e+00 : f32
      %16 = vector.broadcast %cst_15 : f32 to vector<128x128xf32>
      %17 = arith.maximumf %15, %16 : vector<128x128xf32>
      %c0_16 = arith.constant 0 : index
      %c0_17 = arith.constant 0 : index
      %18 = vector.load %arg8[%c0_16, %c0_17] : memref<128x128xf32, #tpu.memory_space<vmem>>, vector<128x128xf32>
      tpu.vector_store %arg8[%c0_16, %c0_17], %17 {strides = array<i32>} : memref<128x128xf32, #tpu.memory_space<vmem>>, vector<128x128xf32>,
    } else {
    }
    return
  }
  func.func @transform_0(%arg0: i32, %arg1: i32) -> (i32, i32) {
    %c0_i32 = arith.constant 0 : i32
    return %arg0, %arg1 : i32, i32
  }
  func.func @transform_1(%arg0: i32, %arg1: i32) -> (i32, i32) {
    %c0_i32 = arith.constant 0 : i32
    %c0_i32_0 = arith.constant 0 : i32
    return %arg1, %c0_i32 : i32, i32
  }
  func.func @transform_2(%arg0: i32, %arg1: i32) -> (i32, i32) {
    %c0_i32 = arith.constant 0 : i32
    %c0_i32_0 = arith.constant 0 : i32
    return %arg0, %c0_i32 : i32, i32
  }
  func.func @transform_3(%arg0: i32, %arg1: i32) -> (i32, i32) {
    %c0_i32 = arith.constant 0 : i32
    %c0_i32_0 = arith.constant 0 : i32
    %c0_i32_1 = arith.constant 0 : i32
    return %c0_i32, %c0_i32_0 : i32, i32
  }
  func.func @transform_4(%arg0: i32, %arg1: i32) -> (i32, i32) {
    %c0_i32 = arith.constant 0 : i32
    %c0_i32_0 = arith.constant 0 : i32
    %c0_i32_1 = arith.constant 0 : i32
    return %c0_i32, %c0_i32_0 : i32, i32
  }
  func.func @transform_5(%arg0: i32, %arg1: i32) -> (i32, i32) {
    %c0_i32 = arith.constant 0 : i32
    %c0_i32_0 = arith.constant 0 : i32
    %c0_i32_1 = arith.constant 0 : i32
    return %c0_i32, %c0_i32_0 : i32, i32
  }
  func.func @transform_6(%arg0: i32, %arg1: i32) -> (i32, i32) {
    %c0_i32 = arith.constant 0 : i32
    %c0_i32_0 = arith.constant 0 : i32
    return %arg0, %c0_i32 : i32, i32
  }
}

</mosaic_0001>

<bundles_post_ra>
// kernel: tpu_custom_call.1
= control target key start
LH: loop header
LB: loop body
LE: loop exit
PB: predicated region body
PF: predicated region fallthrough
CT: control target
= control target key end

     0   :  { %11 = vsyncpa [#allocation4], 0  ;;  %s1477_s0 = inlined_call_operand.hbm [shape: bf16[128,128], index: 0, kind: input, shape index: {}]   ;;  %s1478_s1 = inlined_call_operand.hbm [shape: bf16[128,128], index: 1, kind: input, shape index: {}]   ;;  %s1479_s2 = inlined_call_operand.hbm [shape: bf16[128,128], index: 2, kind: input, shape index: {}]   ;;  %s1480_s3 = inlined_call_operand.hbm [shape: bf16[128,128], index: 3, kind: input, shape index: {}]   ;;  %s1481_s4 = inlined_call_operand.hbm [shape: bf16[128,128], index: 4, kind: input, shape index: {}]   ;;  %s1482_s5 = inlined_call_operand.hbm [shape: f32[1,128], index: 5, kind: input, shape index: {}]   ;;  %s1483_s6 = inlined_call_operand.hbm [shape: f32[128,128], index: 6, kind: output, shape index: {}]  }
   0x1   :  { %12 = vsyncpa [#allocation7], 0 }
   0x2   :  { %13 = vsyncpa [#allocation10], 0 }
   0x3   :  { %14 = vsyncpa [#allocation13], 0 }
   0x4   :  { %15 = vsyncpa [#allocation5], 0  ;;  %s1318_s21 = smov [#allocation6]   ;;  %s1319_s23 = smov [#allocation9]  }
   0x5   :  { %s33_s22 = sshll.u32 %s1318_s21, 4  ;;  %s57_s24 = sshll.u32 %s1319_s23, 4  ;;  %s34_s22 = int_to_ptr.vmem [resolvable:$true] %s33_s22  ;;  %s1364_s24 = int_to_ptr.vmem [resolvable:$true] %s57_s24 }
   0x6   :  { %s1154_s27 = scalar_lea.hbm %s1478_s1, 1024 }
   0x7   :  { %p1155_p0 = scmp.ne.s32.totalorder %s1478_s1, %s1154_s27  ;;  %p1158_p1 = scmp.lt.u32.totalorder %s1154_s27, %s1478_s1 }
   0x9   :  { %p1160_p2 = pnand %p1158_p1, %p1155_p0 }
   0xb   :  { %1163 = shalt.err (!%p1160_p2)
}
   0xc   :  { %s1164_s8 = scalar_lea.vmem %s34_s22, 1024  ;;  %p1169_p4 = scmp.lt.s32.totalorder %s34_s22, %s34_s22 }
   0xd   :  { %p1165_p3 = scmp.ne.s32.totalorder %s34_s22, %s1164_s8  ;;  %p1170_p5 = scmp.lt.s32.totalorder %s1164_s8, %s1164_s8 }
   0xf   :  { %p1171_p6 = por %p1170_p5, %p1169_p4 }
  0x11   :  { %p1172_p7 = pnand %p1171_p6, %p1165_p3 }
  0x13   :  { %1175 = shalt.err (!%p1172_p7)
}
  0x14   :  { %s1320_s9 = smov 64   ;;  %s1321_s10 = smov 4  }
  0x15   :  { %39 = dma.hbm_to_vmem [thread:$0]  %s1478_s1, 1024, %s34_s22, [#allocation7], %s1320_s9, %s1320_s9, %s1321_s10  }
  0x16   :  { %s1176_s15 = scalar_lea.hbm %s1480_s3, 1024 }
  0x17   :  { %p1177_p8 = scmp.ne.s32.totalorder %s1480_s3, %s1176_s15  ;;  %p1180_p9 = scmp.lt.u32.totalorder %s1176_s15, %s1480_s3 }
  0x19   :  { %p1182_p10 = pnand %p1180_p9, %p1177_p8 }
  0x1b   :  { %1185 = shalt.err (!%p1182_p10)
}
  0x1c   :  { %s1186_s20 = scalar_lea.vmem %s1364_s24, 1024  ;;  %p1191_p12 = scmp.lt.s32.totalorder %s1364_s24, %s1364_s24 }
  0x1d   :  { %p1187_p11 = scmp.ne.s32.totalorder %s1364_s24, %s1186_s20  ;;  %p1192_p13 = scmp.lt.s32.totalorder %s1186_s20, %s1186_s20 }
  0x1f   :  { %p1193_p0 = por %p1192_p13, %p1191_p12 }
  0x21   :  { %p1194_p1 = pnand %p1193_p0, %p1187_p11 }
  0x23   :  { %1197 = shalt.err (!%p1194_p1)
}
  0x24   :  { %63 = dma.hbm_to_vmem [thread:$0]  %s1480_s3, 1024, %s1364_s24, [#allocation10], %s1320_s9, %s1320_s9, %s1321_s10  }
  0x25   :  { %s1322_s22 = smov [#allocation3]   ;;  %s1323_s25 = smov [#allocation8]  }
  0x26   :  { %s21_s23 = sshll.u32 %s1322_s22, 4  ;;  %s45_s26 = sshll.u32 %s1323_s25, 4  ;;  %s22_s23 = int_to_ptr.vmem [resolvable:$true] %s21_s23  ;;  %s1401_s26 = int_to_ptr.vmem [resolvable:$true] %s45_s26 }
  0x27   :  { %s1198_s29 = scalar_lea.hbm %s1477_s0, 1024 }
  0x28   :  { %p1199_p2 = scmp.ne.s32.totalorder %s1477_s0, %s1198_s29  ;;  %p1202_p3 = scmp.lt.u32.totalorder %s1198_s29, %s1477_s0 }
  0x2a   :  { %p1204_p4 = pnand %p1202_p3, %p1199_p2 }
  0x2c   :  { %1207 = shalt.err (!%p1204_p4)
}
  0x2d   :  { %s1208_s3 = scalar_lea.vmem %s22_s23, 1024  ;;  %p1213_p6 = scmp.lt.s32.totalorder %s22_s23, %s22_s23 }
  0x2e   :  { %p1209_p5 = scmp.ne.s32.totalorder %s22_s23, %s1208_s3  ;;  %p1214_p7 = scmp.lt.s32.totalorder %s1208_s3, %s1208_s3 }
  0x30   :  { %p1215_p8 = por %p1214_p7, %p1213_p6 }
  0x32   :  { %p1216_p9 = pnand %p1215_p8, %p1209_p5 }
  0x34   :  { %1219 = shalt.err (!%p1216_p9)
}
  0x35   :  { %27 = dma.hbm_to_vmem [thread:$0]  %s1477_s0, 1024, %s22_s23, [#allocation4], %s1320_s9, %s1320_s9, %s1321_s10  }
  0x36   :  { %s1220_s15 = scalar_lea.hbm %s1479_s2, 1024 }
  0x37   :  { %p1221_p10 = scmp.ne.s32.totalorder %s1479_s2, %s1220_s15  ;;  %p1224_p11 = scmp.lt.u32.totalorder %s1220_s15, %s1479_s2 }
  0x39   :  { %p1226_p12 = pnand %p1224_p11, %p1221_p10 }
  0x3b   :  { %1229 = shalt.err (!%p1226_p12)
}
  0x3c   :  { %s1230_s20 = scalar_lea.vmem %s1401_s26, 1024  ;;  %p1235_p0 = scmp.lt.s32.totalorder %s1401_s26, %s1401_s26 }
  0x3d   :  { %p1231_p13 = scmp.ne.s32.totalorder %s1401_s26, %s1230_s20  ;;  %p1236_p1 = scmp.lt.s32.totalorder %s1230_s20, %s1230_s20 }
  0x3f   :  { %p1237_p2 = por %p1236_p1, %p1235_p0 }
  0x41   :  { %p1238_p3 = pnand %p1237_p2, %p1231_p13 }
  0x43   :  { %1241 = shalt.err (!%p1238_p3)
}
  0x44   :  { %51 = dma.hbm_to_vmem [thread:$0]  %s1479_s2, 1024, %s1401_s26, [#allocation7], %s1320_s9, %s1320_s9, %s1321_s10  }
  0x45   :  { %s1324_s21 = smov [#allocation11]   ;;  %s1325_s23 = smov [#allocation12]  }
  0x46   :  { %s69_s22 = sshll.u32 %s1324_s21, 4  ;;  %s82_s25 = sshll.u32 %s1325_s23, 4  ;;  %s70_s22 = int_to_ptr.vmem [resolvable:$true] %s69_s22  ;;  %s83_s25 = int_to_ptr.vmem [resolvable:$true] %s82_s25 }
  0x47   :  { %s1242_s29 = scalar_lea.hbm %s1481_s4, 1024 }
  0x48   :  { %p1243_p4 = scmp.ne.s32.totalorder %s1481_s4, %s1242_s29  ;;  %p1246_p5 = scmp.lt.u32.totalorder %s1242_s29, %s1481_s4 }
  0x4a   :  { %p1248_p6 = pnand %p1246_p5, %p1243_p4 }
  0x4c   :  { %1251 = shalt.err (!%p1248_p6)
}
  0x4d   :  { %s1252_s2 = scalar_lea.vmem %s70_s22, 1024  ;;  %p1257_p8 = scmp.lt.s32.totalorder %s70_s22, %s70_s22 }
  0x4e   :  { %p1253_p7 = scmp.ne.s32.totalorder %s70_s22, %s1252_s2  ;;  %p1258_p9 = scmp.lt.s32.totalorder %s1252_s2, %s1252_s2 }
  0x50   :  { %p1259_p10 = por %p1258_p9, %p1257_p8 }
  0x52   :  { %p1260_p11 = pnand %p1259_p10, %p1253_p7 }
  0x54   :  { %1263 = shalt.err (!%p1260_p11)
}
  0x55   :  { %75 = dma.hbm_to_vmem [thread:$0]  %s1481_s4, 1024, %s70_s22, [#allocation10], %s1320_s9, %s1320_s9, %s1321_s10  }
  0x56   :  { %s1264_s13 = scalar_lea.hbm %s1482_s5, 16 }
  0x57   :  { %p1265_p12 = scmp.ne.s32.totalorder %s1482_s5, %s1264_s13  ;;  %p1268_p13 = scmp.lt.u32.totalorder %s1264_s13, %s1482_s5 }
  0x59   :  { %p1270_p0 = pnand %p1268_p13, %p1265_p12 }
  0x5b   :  { %1273 = shalt.err (!%p1270_p0)
}
  0x5c   :  { %s1274_s18 = scalar_lea.vmem %s83_s25, 16  ;;  %s1278_s19 = scalar_lea.vmem %s83_s25, 32 }
  0x5d   :  { %p1275_p1 = scmp.ne.s32.totalorder %s83_s25, %s1274_s18  ;;  %p1279_p2 = scmp.lt.s32.totalorder %s83_s25, %s83_s25 }
  0x5e   :  { %p1280_p3 = scmp.lt.s32.totalorder %s1278_s19, %s1274_s18 }
  0x60   :  { %p1281_p4 = por %p1280_p3, %p1279_p2 }
  0x62   :  { %p1282_p5 = pnand %p1281_p4, %p1275_p1 }
  0x64   :  { %1285 = shalt.err (!%p1282_p5)
}
  0x65   :  { %85 = dma.hbm_to_vmem [thread:$0]  %s1482_s5, 16, %s83_s25, [#allocation13]  }
  0x66   :  { %1308 = dma.done.wait [#allocation4], 1024  }
  0x67   :  { %1309 = vsyncadd [#allocation4], 4294966272 }
  0x68   :  { %1310 = dma.done.wait [#allocation7], 2048  }
  0x69   :  { %1311 = vsyncadd [#allocation7], 4294965248 }
  0x6a   :  { %1312 = dma.done.wait [#allocation10], 2048  }
  0x6b   :  { %1313 = vsyncadd [#allocation10], 4294965248 }
  0x6c   :  { %1314 = dma.done.wait [#allocation13], 16  }
  0x6d   :  { %1315 = vsyncadd [#allocation13], 4294967280  ;;  %v1114_v0 = vld [vmem:[#allocation6] sm:$0xff]   ;;  %v1115_v1 = vld [vmem:[#allocation6 + $0x8] sm:$0xff]   ;;  %s1326_s5 = smov [#allocation14]  }
  0x6e   :  { %991 = vmatprep.subr.bf16.mxu1 %v1114_v0  ;;  %v1116_v2 = vld [vmem:[#allocation6 + $0x10] sm:$0xff]   ;;  %v1117_v3 = vld [vmem:[#allocation6 + $0x18] sm:$0xff]   ;;  %v1122_v4 = vld [vmem:[#allocation3] sm:$0xff]   ;;  %s855_s10 = sshll.u32 %s1326_s5, 4  ;;  %s856_s10 = int_to_ptr.vmem [resolvable:$true] %s855_s10 }
  0x6f   :  { %992 = vmatpush3.bf16.msra.mxu1 %v1114_v0  ;;  %1007 = vmatprep.mubr.bf16.mxu1 %v1122_v4  ;;  %v1118_v5 = vld [vmem:[#allocation6 + $0x20] sm:$0xff]   ;;  %v1119_v6 = vld [vmem:[#allocation6 + $0x28] sm:$0xff]   ;;  %v1120_v9 = vld [vmem:[#allocation6 + $0x30] sm:$0xff]   ;;  %s1286_s20 = scalar_lea.vmem %s856_s10, 2048  ;;  %p1291_p7 = scmp.lt.s32.totalorder %s856_s10, %s856_s10 }
  0x70   :  { %993 = vmatprep.subr.bf16.mxu1 %v1115_v1  ;;  %v1130_v7 = vld [vmem:[#allocation9] sm:$0xff]   ;;  %v1131_v8 = vld [vmem:[#allocation9 + $0x8] sm:$0xff]   ;;  %v1132_v10 = vld [vmem:[#allocation9 + $0x10] sm:$0xff]   ;;  %p1287_p6 = scmp.ne.s32.totalorder %s856_s10, %s1286_s20  ;;  %p1292_p8 = scmp.lt.s32.totalorder %s1286_s20, %s1286_s20 }
  0x71   :  { %959 = vmatprep.subr.bf16.mxu0 %v1130_v7  ;;  %v1121_v11 = vld [vmem:[#allocation6 + $0x38] sm:$0xff]   ;;  %v1138_v13 = vld [vmem:[#allocation8] sm:$0xff]   ;;  %v1123_v15 = vld [vmem:[#allocation3 + $0x8] sm:$0xff]  }
  0x72   :  { %960 = vmatpush3.bf16.msra.mxu0 %v1130_v7  ;;  %v1133_v12 = vld [vmem:[#allocation9 + $0x18] sm:$0xff]   ;;  %975 = vmatprep.mubr.bf16.mxu0 %v1138_v13  ;;  %v1134_v14 = vld [vmem:[#allocation9 + $0x20] sm:$0xff]   ;;  %v1124_v17 = vld [vmem:[#allocation3 + $0x10] sm:$0xff]   ;;  %p1293_p9 = por %p1292_p8, %p1291_p7 }
  0x73   :  { %994 = vmatpush3.bf16.msra.mxu1 %v1115_v1  ;;  %961 = vmatprep.subr.bf16.mxu0 %v1131_v8  ;;  %v1140_v16 = vld [vmem:[#allocation11] sm:$0xff]   ;;  %v1135_v18 = vld [vmem:[#allocation9 + $0x28] sm:$0xff]   ;;  %v1136_v20 = vld [vmem:[#allocation9 + $0x30] sm:$0xff]  }
  0x74   :  { %995 = vmatprep.subr.bf16.mxu1 %v1116_v2  ;;  %v1141_v19 = vld [vmem:[#allocation11 + $0x8] sm:$0xff]   ;;  %v1125_v21 = vld [vmem:[#allocation3 + $0x18] sm:$0xff]   ;;  %v1126_v22 = vld [vmem:[#allocation3 + $0x20] sm:$0xff]   ;;  %p1294_p10 = pnand %p1293_p9, %p1287_p6 }
  0x75   :  { %v1144_v23 = vld [vmem:[#allocation11 + $0x10] sm:$0xff]   ;;  %v1137_v24 = vld [vmem:[#allocation9 + $0x38] sm:$0xff]   ;;  %v1127_v26 = vld [vmem:[#allocation3 + $0x28] sm:$0xff]  }
  0x76   :  { %962 = vmatpush3.bf16.msra.mxu0 %v1131_v8  ;;  %v1145_v25 = vld [vmem:[#allocation11 + $0x18] sm:$0xff]   ;;  %v1139_v27 = vld [vmem:[#allocation8 + $0x8] sm:$0xff]   ;;  %v1128_v28 = vld [vmem:[#allocation3 + $0x30] sm:$0xff]  }
  0x77   :  { %996 = vmatpush3.bf16.msra.mxu1 %v1116_v2  ;;  %963 = vmatprep.subr.bf16.mxu0 %v1132_v10  ;;  %v1148_v29 = vld [vmem:[#allocation11 + $0x20] sm:$0xff]   ;;  %v1142_v30 = vld [vmem:[#allocation8 + $0x10] sm:$0xff]   ;;  %v1149_v31 = vld [vmem:[#allocation11 + $0x28] sm:$0xff]  }
  0x78   :  { %997 = vmatprep.subr.bf16.mxu1 %v1117_v3  ;;  %v1129_v32 = vld [vmem:[#allocation3 + $0x38] sm:$0xff]   ;;  %v1146_v34 = vld [vmem:[#allocation8 + $0x20] sm:$0xff]   ;;  %v1152_v35 = vld [vmem:[#allocation11 + $0x30] sm:$0xff]  }
  0x79   :  { %v1143_v33 = vld [vmem:[#allocation8 + $0x18] sm:$0xff]   ;;  %v1147_v36 = vld [vmem:[#allocation8 + $0x28] sm:$0xff]   ;;  %v1150_v37 = vld [vmem:[#allocation8 + $0x30] sm:$0xff]  }
  0x7a   :  { %964 = vmatpush3.bf16.msra.mxu0 %v1132_v10  ;;  %v1151_v38 = vld [vmem:[#allocation8 + $0x38] sm:$0xff]   ;;  %v870_v8 = vld [vmem:[#allocation12] ss:$0 sm:$0xff] }
  0x7b   :  { %998 = vmatpush3.bf16.msra.mxu1 %v1117_v3  ;;  %965 = vmatprep.subr.bf16.mxu0 %v1133_v12  ;;  %v1153_v39 = vld [vmem:[#allocation11 + $0x38] sm:$0xff]  }
  0x7c   :  { %999 = vmatprep.subr.bf16.mxu1 %v1118_v5 }
  0x7e   :  { %966 = vmatpush3.bf16.msra.mxu0 %v1133_v12 }
  0x7f   :  { %1000 = vmatpush3.bf16.msra.mxu1 %v1118_v5  ;;  %967 = vmatprep.subr.bf16.mxu0 %v1134_v14 }
  0x80   :  { %1001 = vmatprep.subr.bf16.mxu1 %v1119_v6 }
  0x82   :  { %968 = vmatpush3.bf16.msra.mxu0 %v1134_v14 }
  0x83   :  { %1002 = vmatpush3.bf16.msra.mxu1 %v1119_v6  ;;  %969 = vmatprep.subr.bf16.mxu0 %v1135_v18 }
  0x84   :  { %1003 = vmatprep.subr.bf16.mxu1 %v1120_v9 }
  0x86   :  { %970 = vmatpush3.bf16.msra.mxu0 %v1135_v18 }
  0x87   :  { %1004 = vmatpush3.bf16.msra.mxu1 %v1120_v9  ;;  %971 = vmatprep.subr.bf16.mxu0 %v1136_v20 }
  0x88   :  { %1005 = vmatprep.subr.bf16.mxu1 %v1121_v11 }
  0x8a   :  { %972 = vmatpush3.bf16.msra.mxu0 %v1136_v20 }
  0x8b   :  { %1006 = vmatpush3.bf16.msra.mxu1 %v1121_v11  ;;  %973 = vmatprep.subr.bf16.mxu0 %v1137_v24 }
  0x8c   :  { %1055 = vmatprep.subr.bf16.mxu1 %v1140_v16 }
  0x8e   :  { %1008 = vmatmul.mubr.bf16.vlgmr.msra.gmra.mrb[0].mxu1 %v1123_v15  ;;  %974 = vmatpush3.bf16.msra.mxu0 %v1137_v24 }
  0x8f   :  { %1011 = vmatprep.mubr.bf16.mxu1 %v1124_v17  ;;  %1063 = vmatpush3.bf16.msra.mxu1 %v1140_v16 }
  0x90   :  { %1056 = vmatprep.subr.bf16.mxu1 %v1141_v19  ;;  %1023 = vmatprep.subr.bf16.mxu0 %v1140_v16 }
  0x91   :  { %976 = vmatmul.mubr.bf16.vlgmr.msra.gmra.mrb[0].mxu0 %v1139_v27 }
  0x92   :  { %1024 = vmatpush3.bf16.msra.mxu0 %v1140_v16  ;;  %979 = vmatprep.mubr.bf16.mxu0 %v1142_v30 }
  0x93   :  { %1064 = vmatpush3.bf16.msra.mxu1 %v1141_v19  ;;  %1025 = vmatprep.subr.bf16.mxu0 %v1141_v19 }
  0x94   :  { %1057 = vmatprep.subr.bf16.mxu1 %v1144_v23 }
  0x96   :  { %1012 = vmatmul.mubr.bf16.gmra.mrb[4].mxu1 %v1125_v21  ;;  %1026 = vmatpush3.bf16.msra.mxu0 %v1141_v19 }
  0x97   :  { %1015 = vmatprep.mubr.bf16.mxu1 %v1126_v22  ;;  %1065 = vmatpush3.bf16.msra.mxu1 %v1144_v23 }
  0x98   :  { %1058 = vmatprep.subr.bf16.mxu1 %v1145_v25  ;;  %1027 = vmatprep.subr.bf16.mxu0 %v1144_v23 }
  0x99   :  { %980 = vmatmul.mubr.bf16.gmra.mrb[4].mxu0 %v1143_v33 }
  0x9a   :  { %1028 = vmatpush3.bf16.msra.mxu0 %v1144_v23  ;;  %983 = vmatprep.mubr.bf16.mxu0 %v1146_v34 }
  0x9b   :  { %1066 = vmatpush3.bf16.msra.mxu1 %v1145_v25  ;;  %1029 = vmatprep.subr.bf16.mxu0 %v1145_v25 }
  0x9c   :  { %1059 = vmatprep.subr.bf16.mxu1 %v1148_v29 }
  0x9e   :  { %1016 = vmatmul.mubr.bf16.gmra.mrb[8].mxu1 %v1127_v26  ;;  %1030 = vmatpush3.bf16.msra.mxu0 %v1145_v25 }
  0x9f   :  { %1019 = vmatprep.mubr.bf16.mxu1 %v1128_v28  ;;  %1067 = vmatpush3.bf16.msra.mxu1 %v1148_v29 }
  0xa0   :  { %1060 = vmatprep.subr.bf16.mxu1 %v1149_v31  ;;  %1031 = vmatprep.subr.bf16.mxu0 %v1148_v29 }
  0xa1   :  { %984 = vmatmul.mubr.bf16.gmra.mrb[8].mxu0 %v1147_v36 }
  0xa2   :  { %1032 = vmatpush3.bf16.msra.mxu0 %v1148_v29  ;;  %987 = vmatprep.mubr.bf16.mxu0 %v1150_v37 }
  0xa3   :  { %1068 = vmatpush3.bf16.msra.mxu1 %v1149_v31  ;;  %1033 = vmatprep.subr.bf16.mxu0 %v1149_v31 }
  0xa4   :  { %1061 = vmatprep.subr.bf16.mxu1 %v1152_v35 }
  0xa6   :  { %1020 = vmatmul.mubr.bf16.gmra.mrb[12].mxu1 %v1129_v32  ;;  %1034 = vmatpush3.bf16.msra.mxu0 %v1149_v31 }
  0xa7   :  { %1069 = vmatpush3.bf16.msra.mxu1 %v1152_v35  ;;  %1035 = vmatprep.subr.bf16.mxu0 %v1152_v35 }
  0xa8   :  { %1062 = vmatprep.subr.bf16.mxu1 %v1153_v39 }
  0xa9   :  { %988 = vmatmul.mubr.bf16.gmra.mrb[12].mxu0 %v1151_v38 }
  0xaa   :  { %1036 = vmatpush3.bf16.msra.mxu0 %v1152_v35 }
  0xab   :  { %1037 = vmatprep.subr.bf16.mxu0 %v1153_v39  ;;  %1070 = vmatpush3.bf16.msra.mxu1 %v1153_v39 }
  0xae   :  { %1038 = vmatpush3.bf16.msra.mxu0 %v1153_v39 }
 0x161   :  { %v1009_v40 = vpop.f32.mrb[0].mxu1 }
 0x162   :  { %v519_v41 = vpop.f32.mrb[1].mxu1 }
 0x163   :  { %v1010_v42 = vpop.f32.mrb[2].mxu1 }
 0x164   :  { %v599_v43 = vpack.c.bf16 %v1010_v42, %v1009_v40  ;;  %v522_v44 = vpop.f32.mrb[3].mxu1 }
 0x165   :  { %v598_v45 = vpack.c.bf16 %v522_v44, %v519_v41 }
 0x167   :  { %1039 = vmatprep.mubr.bf16.mxu0 %v598_v45 }
 0x168   :  { %1040 = vmatmul.mubr.bf16.vlgmr.msra.gmra.mrb[0].mxu0 %v599_v43 }
 0x169   :  { %v1013_v46 = vpop.f32.mrb[4].mxu1 }
 0x16a   :  { %v535_v47 = vpop.f32.mrb[5].mxu1 }
 0x16b   :  { %v1014_v48 = vpop.f32.mrb[6].mxu1 }
 0x16c   :  { %v601_v49 = vpack.c.bf16 %v1014_v48, %v1013_v46  ;;  %v538_v50 = vpop.f32.mrb[7].mxu1 }
 0x16d   :  { %v600_v51 = vpack.c.bf16 %v538_v50, %v535_v47 }
 0x16f   :  { %1043 = vmatprep.mubr.bf16.mxu0 %v600_v51 }
 0x170   :  { %1044 = vmatmul.mubr.bf16.gmra.mrb[4].mxu0 %v601_v49 }
 0x171   :  { %v1017_v52 = vpop.f32.mrb[8].mxu1 }
 0x172   :  { %v551_v53 = vpop.f32.mrb[9].mxu1 }
 0x173   :  { %v1018_v54 = vpop.f32.mrb[10].mxu1 }
 0x174   :  { %v603_v55 = vpack.c.bf16 %v1018_v54, %v1017_v52  ;;  %v554_v56 = vpop.f32.mrb[11].mxu1  ;;  %v985_v0 = vpop.f32.mrb[8].mxu0 }
 0x175   :  { %v602_v57 = vpack.c.bf16 %v554_v56, %v551_v53  ;;  %v310_v1 = vpop.f32.mrb[9].mxu0  ;;  %v319_v33 = vadd.f32 %v985_v0, %v870_v8 }
 0x176   :  { %v986_v2 = vpop.f32.mrb[10].mxu0  ;;  %v311_v34 = vadd.f32 %v870_v8, %v310_v1 }
 0x177   :  { %1047 = vmatprep.mubr.bf16.mxu1 %v602_v57  ;;  %v313_v3 = vpop.f32.mrb[11].mxu0  ;;  %v322_v36 = vadd.f32 %v986_v2, %v870_v8 }
 0x178   :  { %1048 = vmatmul.mubr.bf16.vlgmr.msra.gmra.mrb[16].mxu1 %v603_v55  ;;  %v314_v39 = vadd.f32 %v870_v8, %v313_v3 }
 0x179   :  { %v1021_v58 = vpop.f32.mrb[12].mxu1 }
 0x17a   :  { %v567_v59 = vpop.f32.mrb[13].mxu1 }
 0x17b   :  { %v1022_v60 = vpop.f32.mrb[14].mxu1 }
 0x17c   :  { %v605_v61 = vpack.c.bf16 %v1022_v60, %v1021_v58  ;;  %v570_v62 = vpop.f32.mrb[15].mxu1  ;;  %v989_v4 = vpop.f32.mrb[12].mxu0 }
 0x17d   :  { %v604_v63 = vpack.c.bf16 %v570_v62, %v567_v59  ;;  %v326_v5 = vpop.f32.mrb[13].mxu0  ;;  %v335_v49 = vadd.f32 %v989_v4, %v870_v8 }
 0x17e   :  { %v990_v6 = vpop.f32.mrb[14].mxu0  ;;  %v327_v50 = vadd.f32 %v870_v8, %v326_v5 }
 0x17f   :  { %1051 = vmatprep.mubr.bf16.mxu1 %v604_v63  ;;  %v329_v7 = vpop.f32.mrb[15].mxu0  ;;  %v338_v52 = vadd.f32 %v990_v6, %v870_v8 }
 0x180   :  { %1052 = vmatmul.mubr.bf16.gmra.mrb[20].mxu1 %v605_v61  ;;  %v330_v55 = vadd.f32 %v870_v8, %v329_v7 }
 0x23b   :  { %v1041_v9 = vpop.f32.mrb[0].mxu0 }
 0x23c   :  { %v1071_v10 = vadd.f32 %v1041_v9, %v870_v8  ;;  %v704_v11 = vpop.f32.mrb[1].mxu0 }
 0x23d   :  { %v1072_v12 = vadd.f32 %v870_v8, %v704_v11  ;;  %v1042_v13 = vpop.f32.mrb[2].mxu0 }
 0x23e   :  { %v820_v14 = vmax.f32 %v1071_v10, 0.0  ;;  %v1073_v15 = vadd.f32 %v1042_v13, %v870_v8  ;;  %v707_v16 = vpop.f32.mrb[3].mxu0 }
 0x23f   :  { %v818_v17 = vmax.f32 %v1072_v12, 0.0  ;;  %v1074_v18 = vadd.f32 %v870_v8, %v707_v16 }
 0x240   :  { %836 = vst [vmem:[#allocation14 + $0x10] sm:$0xff] %v820_v14  ;;  %v821_v19 = vmax.f32 %v1073_v15, 0.0 }
 0x241   :  { %834 = vst [vmem:[#allocation14] sm:$0xff] %v818_v17  ;;  %v819_v20 = vmax.f32 %v1074_v18, 0.0 }
 0x242   :  { %837 = vst [vmem:[#allocation14 + $0x18] sm:$0xff] %v821_v19 }
 0x243   :  { %835 = vst [vmem:[#allocation14 + $0x8] sm:$0xff] %v819_v20  ;;  %v1045_v21 = vpop.f32.mrb[4].mxu0 }
 0x244   :  { %v1075_v22 = vadd.f32 %v1045_v21, %v870_v8  ;;  %v720_v23 = vpop.f32.mrb[5].mxu0 }
 0x245   :  { %v1076_v24 = vadd.f32 %v870_v8, %v720_v23  ;;  %v1046_v25 = vpop.f32.mrb[6].mxu0 }
 0x246   :  { %v824_v26 = vmax.f32 %v1075_v22, 0.0  ;;  %v1077_v27 = vadd.f32 %v1046_v25, %v870_v8  ;;  %v723_v28 = vpop.f32.mrb[7].mxu0 }
 0x247   :  { %v822_v29 = vmax.f32 %v1076_v24, 0.0  ;;  %v1078_v30 = vadd.f32 %v870_v8, %v723_v28 }
 0x248   :  { %840 = vst [vmem:[#allocation14 + $0x30] sm:$0xff] %v824_v26  ;;  %v825_v31 = vmax.f32 %v1077_v27, 0.0 }
 0x249   :  { %838 = vst [vmem:[#allocation14 + $0x20] sm:$0xff] %v822_v29  ;;  %v823_v32 = vmax.f32 %v1078_v30, 0.0 }
 0x24a   :  { %841 = vst [vmem:[#allocation14 + $0x38] sm:$0xff] %v825_v31 }
 0x24b   :  { %839 = vst [vmem:[#allocation14 + $0x28] sm:$0xff] %v823_v32  ;;  %v1049_v35 = vpop.f32.mrb[16].mxu1 }
 0x24c   :  { %v777_v37 = vadd.f32 %v1049_v35, %v319_v33  ;;  %v736_v38 = vpop.f32.mrb[17].mxu1 }
 0x24d   :  { %v775_v40 = vadd.f32 %v736_v38, %v311_v34  ;;  %v1050_v41 = vpop.f32.mrb[18].mxu1 }
 0x24e   :  { %v828_v42 = vmax.f32 %v777_v37, 0.0  ;;  %v778_v43 = vadd.f32 %v1050_v41, %v322_v36  ;;  %v739_v44 = vpop.f32.mrb[19].mxu1 }
 0x24f   :  { %v826_v45 = vmax.f32 %v775_v40, 0.0  ;;  %v776_v46 = vadd.f32 %v739_v44, %v314_v39 }
 0x250   :  { %844 = vst [vmem:[#allocation14 + $0x50] sm:$0xff] %v828_v42  ;;  %v829_v47 = vmax.f32 %v778_v43, 0.0 }
 0x251   :  { %842 = vst [vmem:[#allocation14 + $0x40] sm:$0xff] %v826_v45  ;;  %v827_v48 = vmax.f32 %v776_v46, 0.0 }
 0x252   :  { %845 = vst [vmem:[#allocation14 + $0x58] sm:$0xff] %v829_v47 }
 0x253   :  { %843 = vst [vmem:[#allocation14 + $0x48] sm:$0xff] %v827_v48  ;;  %v1053_v51 = vpop.f32.mrb[20].mxu1 }
 0x254   :  { %v781_v53 = vadd.f32 %v1053_v51, %v335_v49  ;;  %v752_v54 = vpop.f32.mrb[21].mxu1 }
 0x255   :  { %v779_v56 = vadd.f32 %v752_v54, %v327_v50  ;;  %v1054_v57 = vpop.f32.mrb[22].mxu1 }
 0x256   :  { %v832_v58 = vmax.f32 %v781_v53, 0.0  ;;  %v782_v59 = vadd.f32 %v1054_v57, %v338_v52  ;;  %v755_v60 = vpop.f32.mrb[23].mxu1 }
 0x257   :  { %v830_v61 = vmax.f32 %v779_v56, 0.0  ;;  %v780_v62 = vadd.f32 %v755_v60, %v330_v55 }
 0x258   :  { %848 = vst [vmem:[#allocation14 + $0x70] sm:$0xff] %v832_v58  ;;  %v833_v63 = vmax.f32 %v782_v59, 0.0 }
 0x259   :  { %846 = vst [vmem:[#allocation14 + $0x60] sm:$0xff] %v830_v61  ;;  %v831_v0 = vmax.f32 %v780_v62, 0.0 }
 0x25a   :  { %849 = vst [vmem:[#allocation14 + $0x78] sm:$0xff] %v833_v63 }
 0x25b   :  { %847 = vst [vmem:[#allocation14 + $0x68] sm:$0xff] %v831_v0 }
 0x25c   :  { %1297 = shalt.err (!%p1294_p10)
}
 0x25d   :  { %s1298_s21 = scalar_lea.hbm %s1483_s6, 2048 }
 0x25e   :  { %p1299_p11 = scmp.ne.s32.totalorder %s1483_s6, %s1298_s21  ;;  %p1302_p12 = scmp.lt.u32.totalorder %s1298_s21, %s1483_s6 }
 0x260   :  { %p1304_p13 = pnand %p1302_p12, %p1299_p11 }
 0x262   :  { %1307 = shalt.err (!%p1304_p13)
}
 0x263   :  { %s1327_s28 = smov 128   ;;  %s1328_s29 = smov 8  }
 0x264   :  { %861 = dma.vmem_to_hbm [thread:$0]  %s856_s10, 2048, %s1483_s6, [#allocation5], %s1327_s28, %s1327_s28, %s1328_s29  }
 0x265   :  { %1316 = dma.done.wait [#allocation5], 2048  }
 0x266   :  { %1317 = vsyncadd [#allocation5], 4294965248 }
 0x267   :  { %865 = vsyncpa [#allocation4], 1 }
 0x268   :  { %866 = vsyncpa [#allocation7], 1 }
 0x269   :  { %867 = vsyncpa [#allocation10], 1 }
 0x26a   :  { %868 = vsyncpa [#allocation13], 1 }
 0x26b   :  { %869 = vsyncpa [#allocation5], 1 }

</bundles_post_ra>
